<compile_context>
chip_gen: v7x
topology: tpu7x:2x2x1
jax: 0.10.0
libtpu: 0.0.40
codegen_flags: <defaults>
</compile_context>

<pallas_src>
import jax
import jax.numpy as jnp
from jax import lax
from jax.experimental import pallas as pl
from jax.experimental.pallas import tpu as pltpu


def _norm_kernel(s_ref, x_ref, o_ref):
    # s_ref: (1, 1) learnable scale in SMEM
    # x_ref / o_ref: (TB, D) tile in VMEM; L2 norm is over the last axis.
    xf = x_ref[...].astype(jnp.float32)
    sumsq = jnp.sum(xf * xf, axis=-1, keepdims=True)          # (TB, 1)
    # rsqrt lowers to the EUP (its own VLIW slot) instead of a VPU sqrt+div
    # chain, and norm_s is folded into the per-row (TB, 1) scale so only one
    # full (TB, D) multiply remains.
    # NOTE: no epsilon on purpose — matches torch.norm (all-zero row -> nan).
    scale = s_ref[0, 0] * lax.rsqrt(sumsq)                     # (TB, 1)
    o_ref[...] = (xf * scale).astype(o_ref.dtype)


def _round_up(v, m):
    return ((v + m - 1) // m) * m


def _choose_tile(B, D, itemsize):
    """Pick the largest sublane-aligned batch tile that keeps the pipelined
    VMEM footprint small on every generation (sized against v7x's 64 MiB)."""
    align = max(8, 32 // itemsize)             # 8 (f32), 16 (bf16), 32 (int8)
    b_pad_min = _round_up(B, align)
    # Target ~2 MiB of f32 compute per block: double-buffered in+out plus f32
    # temporaries stays well under the scoped-VMEM limit we request below.
    target_block_bytes = 2 * 1024 * 1024
    tb = max(align, (target_block_bytes // (D * 4)) // align * align)
    tb = min(tb, b_pad_min)
    # Keep >=2 grid steps when possible so the "parallel" axis can shard
    # across v7x's two TensorCores (a grid of 1 idles a full core there).
    if tb >= b_pad_min and b_pad_min >= 2 * align:
        tb = max(align, (b_pad_min // 2) // align * align)
    b_pad = _round_up(B, tb)
    return tb, b_pad


def _normalize_2d(x, norm_s):
    """norm_s * x / ||x||_2 per row, x is (B, D)."""
    B, D = x.shape
    itemsize = jnp.dtype(x.dtype).itemsize
    tb, b_pad = _choose_tile(B, D, itemsize)

    # Pad B up to a multiple of the tile (with ones, so padded rows never
    # produce inf/nan) instead of falling back to a single whole-array block.
    if b_pad != B:
        pad = jnp.ones((b_pad - B, D), dtype=x.dtype)
        xp = jnp.concatenate([x, pad], axis=0)
    else:
        xp = x

    # Explicit scoped-VMEM budget: double-buffered in + out, plus headroom for
    # the f32 upcast temporaries. Capped at 32 MiB (safe on v5e/v6e/v7x).
    block_bytes = tb * D * itemsize
    f32_block = tb * D * 4
    vmem_limit = int(min(max(4 * block_bytes + 4 * f32_block, 16 * 2**20),
                         32 * 2**20))

    s = jnp.asarray(norm_s, dtype=jnp.float32).reshape(1, 1)

    # TODO(synk): for very large D (block no longer fits even at TB=8), add a
    # second "arbitrary" grid axis over D with a (TB,1) accumulator (two-pass).
    # TODO(synk): for D < 128 at scale, a transposed (D, B) lane-dense layout
    # would avoid masked partial stores; not worth the complexity here.
    out = pl.pallas_call(
        _norm_kernel,
        out_shape=jax.ShapeDtypeStruct((b_pad, D), x.dtype),
        grid_spec=pl.GridSpec(
            grid=(b_pad // tb,),
            in_specs=[
                pl.BlockSpec(memory_space=pltpu.MemorySpace.SMEM),
                pl.BlockSpec((tb, D), lambda i: (i, 0)),
            ],
            out_specs=pl.BlockSpec((tb, D), lambda i: (i, 0)),
        ),
        compiler_params=pltpu.CompilerParams(
            dimension_semantics=("parallel",),
            vmem_limit_bytes=vmem_limit,
        ),
    )(s, xp)

    return out[:B] if b_pad != B else out


def normalization_layer(x, norm_s):
    """Matches NormalizationLayer.forward: norm_s * x / torch.norm(x, dim=1)."""
    if x.ndim == 2:
        return _normalize_2d(x, norm_s)
    # General N-D: normalize over axis 1 — move it to the last axis, flatten
    # the rest into rows, run the 2D kernel, and restore the original layout.
    moved = jnp.moveaxis(x, 1, -1)
    flat = moved.reshape(-1, moved.shape[-1])
    out = _normalize_2d(flat, norm_s).reshape(moved.shape)
    return jnp.moveaxis(out, -1, 1)


if __name__ == "__main__":
    key = jax.random.PRNGKey(0)
    norm_s = 1.5  # deterministic "learned" scale (nn.Parameter init was 1.0)

    # Case 1: f32, B multiple of 8 (no padding path).
    k1, k2, k3 = jax.random.split(key, 3)
    x1 = jax.random.normal(k1, (8, 32), dtype=jnp.float32)
    o1 = jax.block_until_ready(normalization_layer(x1, norm_s))
    r1 = norm_s * x1 / jnp.linalg.norm(x1, axis=1, keepdims=True)
    assert o1.shape == x1.shape
    assert jnp.allclose(o1, r1, atol=1e-5, rtol=1e-5)

    # Case 2: f32, B not a multiple of 8 (exercises the padding path).
    x2 = jax.random.normal(k2, (12, 32), dtype=jnp.float32)
    o2 = jax.block_until_ready(normalization_layer(x2, norm_s))
    r2 = norm_s * x2 / jnp.linalg.norm(x2, axis=1, keepdims=True)
    assert o2.shape == x2.shape
    assert jnp.allclose(o2, r2, atol=1e-5, rtol=1e-5)

    # Case 3: bf16 input (f32 accumulation inside the kernel, bf16 output).
    x3 = jax.random.normal(k3, (16, 32), dtype=jnp.float32).astype(jnp.bfloat16)
    o3 = jax.block_until_ready(normalization_layer(x3, norm_s))
    x3f = x3.astype(jnp.float32)
    r3 = norm_s * x3f / jnp.linalg.norm(x3f, axis=1, keepdims=True)
    assert o3.shape == x3.shape
    assert jnp.allclose(o3.astype(jnp.float32), r3, atol=2e-2, rtol=2e-2)

    print("KERNEL_OK")
</pallas_src>

<mosaic_0001>
module attributes {stable_mosaic.version = 11 : i64} {
  func.func @_norm_kernel(%arg0: i32, %arg1: memref<1x1xf32, #tpu.memory_space<smem>>, %arg2: memref<8x32xf32, #tpu.memory_space<vmem>>, %arg3: memref<8x32xf32, #tpu.memory_space<vmem>>) attributes {dimension_semantics = [#tpu.dimension_semantics<parallel>], iteration_bounds = array<i64: 1>, scalar_prefetch = 0 : i64, scratch_operands = 0 : i64, tpu.core_type = #tpu.core_type<tc>, window_params = [{transform_indices = @transform_0, window_bounds = array<i64: 1, 1>}, {transform_indices = @transform_1, window_bounds = array<i64: 8, 32>}, {transform_indices = @transform_2, window_bounds = array<i64: 8, 32>}]} {
    %c0 = arith.constant 0 : index
    %c0_0 = arith.constant 0 : index
    %0 = vector.load %arg2[%c0, %c0_0] : memref<8x32xf32, #tpu.memory_space<vmem>>, vector<8x32xf32>
    %1 = arith.mulf %0, %0 : vector<8x32xf32>
    %cst = arith.constant dense<0.000000e+00> : vector<8xf32>
    %2 = vector.multi_reduction <add>, %1, %cst [1] : vector<8x32xf32> to vector<8xf32>
    %3 = vector.shape_cast %2 : vector<8xf32> to vector<8x1xf32>
    %c0_1 = arith.constant 0 : index
    %c0_2 = arith.constant 0 : index
    %4 = memref.load %arg1[%c0_1, %c0_2] : memref<1x1xf32, #tpu.memory_space<smem>>
    %5 = math.rsqrt %3 : vector<8x1xf32>
    %6 = vector.broadcast %4 : f32 to vector<8x1xf32>
    %7 = arith.mulf %6, %5 : vector<8x1xf32>
    %8 = vector.broadcast %7 : vector<8x1xf32> to vector<8x32xf32>
    %9 = arith.mulf %0, %8 : vector<8x32xf32>
    %c0_3 = arith.constant 0 : index
    %c0_4 = arith.constant 0 : index
    %10 = vector.load %arg3[%c0_3, %c0_4] : memref<8x32xf32, #tpu.memory_space<vmem>>, vector<8x32xf32>
    tpu.vector_store %arg3[%c0_3, %c0_4], %9 {strides = array<i32>} : memref<8x32xf32, #tpu.memory_space<vmem>>, vector<8x32xf32>,
    return
  }
  func.func @transform_0(%arg0: i32) -> (i32, i32) {
    %c0_i32 = arith.constant 0 : i32
    %c0_i32_0 = arith.constant 0 : i32
    %c0_i32_1 = arith.constant 0 : i32
    return %c0_i32, %c0_i32_0 : i32, i32
  }
  func.func @transform_1(%arg0: i32) -> (i32, i32) {
    %c0_i32 = arith.constant 0 : i32
    %c0_i32_0 = arith.constant 0 : i32
    return %arg0, %c0_i32 : i32, i32
  }
  func.func @transform_2(%arg0: i32) -> (i32, i32) {
    %c0_i32 = arith.constant 0 : i32
    %c0_i32_0 = arith.constant 0 : i32
    return %arg0, %c0_i32 : i32, i32
  }
}

</mosaic_0001>

<bundles_post_ra>
// kernel: tpu_custom_call.1
= control target key start
LH: loop header
LB: loop body
LE: loop exit
PB: predicated region body
PF: predicated region fallthrough
CT: control target
= control target key end

     0   :  { %8 = vsyncpa [#allocation4], 0  ;;  %s148_s0 = inlined_call_operand.<no memory space> [shape: f32[1,1], index: 0, kind: input, shape index: {}]   ;;  %s149_s1 = inlined_call_operand.hbm [shape: f32[8,32], index: 1, kind: input, shape index: {}]   ;;  %s150_s2 = inlined_call_operand.hbm [shape: f32[8,32], index: 2, kind: output, shape index: {}]  }
   0x1   :  { %9 = vsyncpa [#allocation5], 0  ;;  %s104_s9 = smov [#allocation3]   ;;  %s56_s13 = scalar_lea.hbm %s149_s1, 128 }
   0x2   :  { %s18_s10 = sshll.u32 %s104_s9, 4  ;;  %p57_p0 = scmp.ne.s32.totalorder %s149_s1, %s56_s13  ;;  %s19_s10 = int_to_ptr.vmem [resolvable:$true] %s18_s10 }
   0x3   :  { %p60_p1 = scmp.lt.u32.totalorder %s56_s13, %s149_s1 }
   0x5   :  { %p62_p2 = pnand %p60_p1, %p57_p0 }
   0x7   :  { %65 = shalt.err (!%p62_p2)
}
   0x8   :  { %s66_s18 = scalar_lea.vmem %s19_s10, 128  ;;  %p71_p4 = scmp.lt.s32.totalorder %s19_s10, %s19_s10 }
   0x9   :  { %p67_p3 = scmp.ne.s32.totalorder %s19_s10, %s66_s18  ;;  %p72_p5 = scmp.lt.s32.totalorder %s66_s18, %s66_s18 }
   0xb   :  { %p73_p6 = por %p72_p5, %p71_p4 }
   0xd   :  { %p74_p7 = pnand %p73_p6, %p67_p3 }
   0xf   :  { %77 = shalt.err (!%p74_p7)
}
  0x10   :  { %21 = dma.hbm_to_vmem [thread:$0]  %s149_s1, 128, %s19_s10, [#allocation4]  }
  0x11   :  { %100 = dma.done.wait [#allocation4], 128  }
  0x12   :  { %101 = vsyncadd [#allocation4], 4294967168  ;;  %v25_v0 = vld [vmem:[#allocation3] sm:$0xff]  ;;  %vm27_vm0 = vcmask 261120   ;;  %v33_v4 = vstv %s148_s0  ;;  %s105_s23 = smov [#allocation6]  }
  0x13   :  { %v26_v1 = vmul.f32 %v25_v0, %v25_v0  ;;  %s43_s24 = sshll.u32 %s105_s23, 4  ;;  %s44_s24 = int_to_ptr.vmem [resolvable:$true] %s43_s24 }
  0x14   :  { %s78_s1 = scalar_lea.vmem %s44_s24, 128  ;;  %p83_p9 = scmp.lt.s32.totalorder %s44_s24, %s44_s24 }
  0x15   :  { %v28_v2 = vsel %vm27_vm0, %v26_v1, 0.0  ;;  %p79_p8 = scmp.ne.s32.totalorder %s44_s24, %s78_s1  ;;  %p84_p10 = scmp.lt.s32.totalorder %s78_s1, %s78_s1 }
  0x16   :  { %29 = vadd.xlane.f32.xlu0 %v28_v2 }
  0x17   :  { %p85_p11 = por %p84_p10, %p83_p9 }
  0x19   :  { %p86_p12 = pnand %p85_p11, %p79_p8 }
  0xa3   :  { %v30_v3 = vpop.xlane.xlu0 %29 }
  0xa4   :  { %54 = vrsqrt.f32 %v30_v3 }
  0xae   :  { %v55_v5 = vpop.eup %54 }
  0xaf   :  { %v34_v6 = vmul.f32 %v55_v5, %v33_v4 }
  0xb1   :  { %v35_v7 = vmul.f32 %v34_v6, %v25_v0 }
  0xb3   :  { %36 = vst.msk [vmem:[#allocation6] sm:$0xff] %vm27_vm0, %v35_v7 }
  0xb4   :  { %89 = shalt.err (!%p86_p12)
}
  0xb5   :  { %s90_s27 = scalar_lea.hbm %s150_s2, 128 }
  0xb6   :  { %p91_p13 = scmp.ne.s32.totalorder %s150_s2, %s90_s27  ;;  %p94_p0 = scmp.lt.u32.totalorder %s90_s27, %s150_s2 }
  0xb8   :  { %p96_p1 = pnand %p94_p0, %p91_p13 }
  0xba   :  { %99 = shalt.err (!%p96_p1)
}
  0xbb   :  { %46 = dma.vmem_to_hbm [thread:$0]  %s44_s24, 128, %s150_s2, [#allocation5]  }
  0xbc   :  { %102 = dma.done.wait [#allocation5], 128  }
  0xbd   :  { %103 = vsyncadd [#allocation5], 4294967168 }
  0xbe   :  { %50 = vsyncpa [#allocation4], 1 }
  0xbf   :  { %51 = vsyncpa [#allocation5], 1 }

</bundles_post_ra>
